<compile_context>
chip_gen: v6e
topology: v6e:2x2x1
jax: 0.10.0
libtpu: 0.0.40
codegen_flags: <defaults>
</compile_context>

<pallas_src>
import jax
import jax.numpy as jnp
from jax.experimental import pallas as pl
from jax.experimental.pallas import tpu as pltpu


def _round_up(n, m):
    return ((n + m - 1) // m) * m


def _mlp_kernel(x_ref, w1_ref, t1_ref, w2_ref, t2_ref, w3_ref, b3_ref, o_ref):
    # Layer 1: x arrives as f32 straight from HBM; cast to bf16 in-register
    # for the MXU (no wrapper-side astype pass over HBM).  BN scale is
    # pre-folded into w1; accumulate in f32; shift + ReLU in f32.
    # Dropout (eval) = identity.
    x = x_ref[...].astype(jnp.bfloat16)
    h1 = jnp.dot(x, w1_ref[...], preferred_element_type=jnp.float32)
    h1 = jnp.maximum(h1 + t1_ref[...], 0.0)
    # Layer 2: activations stay f32 (no bf16 re-cast between layers; VPU math
    # stays f32 which is also v5e-safe).
    h2 = jnp.dot(h1, w2_ref[...], preferred_element_type=jnp.float32)
    h2 = jnp.maximum(h2 + t2_ref[...], 0.0)
    # Layer 3: final Linear written directly at the true (narrow) class width.
    o_ref[...] = (jnp.dot(h2, w3_ref[...], preferred_element_type=jnp.float32)
                  + b3_ref[...])


def prepare_kernel_params(params):
    """One-time param transform: fold BN scales into weights and cast the
    (HBM-resident but tiny) layer-1 weight to bf16.

    NOTE: all weights here are [in_features, out_features].  Real PyTorch
    checkpoints store nn.Linear.weight as [out, in] and must be transposed
    before being passed in.
    """
    w1 = (params["w1"] * params["s1"]).astype(jnp.bfloat16)     # [384, 64]
    t1 = params["t1"].astype(jnp.float32)                        # [1, 64]
    w2 = (params["w2"] * params["s2"]).astype(jnp.float32)       # [64, 64]
    t2 = params["t2"].astype(jnp.float32)                        # [1, 64]
    w3 = params["w3"].astype(jnp.float32)                        # [64, C]
    b3 = params["b3"].astype(jnp.float32)                        # [1, C]
    return {"w1": w1, "t1": t1, "w2": w2, "t2": t2, "w3": w3, "b3": b3,
            "num_classes": w3.shape[1]}


def comb_fc_forward(x, kparams, *, block_b=2048):
    """Fused PrdFC forward. x: [B, 384] float32 -> [B, numClasses] float32."""
    B, F = x.shape
    num_classes = kparams["num_classes"]
    w1, t1 = kparams["w1"], kparams["t1"]
    w2, t2 = kparams["w2"], kparams["t2"]
    w3, b3 = kparams["w3"], kparams["b3"]

    # Batch tile: multiple of 16 (bf16 sublane packing), capped at ceil(B/2)
    # so the grid has >=2 steps when B permits (v7x megacore sharding), and
    # never larger than the 8-rounded batch.  No padding of x: the grid is
    # ceil(B/tb) and Pallas masks the ragged last block on writeback.
    half_b = -(-B // 2)
    tb = min(_round_up(block_b, 16), _round_up(half_b, 16), _round_up(B, 8))
    tb = max(tb, 8)
    grid = (pl.cdiv(B, tb),)

    const = lambda i: (0, 0)  # weights/shifts stay VMEM-resident across steps

    cost = pl.CostEstimate(
        flops=2 * B * (F * w1.shape[1] + w2.shape[0] * w2.shape[1]
                       + w3.shape[0] * num_classes),
        transcendentals=0,
        bytes_accessed=(B * F * 4 + B * num_classes * 4 + w1.size * 2
                        + (t1.size + w2.size + t2.size + w3.size + b3.size) * 4),
    )

    out = pl.pallas_call(
        _mlp_kernel,
        out_shape=jax.ShapeDtypeStruct((B, num_classes), jnp.float32),
        grid=grid,
        in_specs=[
            pl.BlockSpec((tb, F), lambda i: (i, 0)),
            pl.BlockSpec(w1.shape, const),
            pl.BlockSpec(t1.shape, const),
            pl.BlockSpec(w2.shape, const),
            pl.BlockSpec(t2.shape, const),
            pl.BlockSpec(w3.shape, const),
            pl.BlockSpec(b3.shape, const),
        ],
        out_specs=pl.BlockSpec((tb, num_classes), lambda i: (i, 0)),
        compiler_params=pltpu.CompilerParams(
            dimension_semantics=("parallel",),
            vmem_limit_bytes=32 * 1024 * 1024),
        cost_estimate=cost,
    )(x, w1, t1, w2, t2, w3, b3)

    return out


def init_params(key, in_features=384, hidden1=64, hidden2=64, num_classes=4,
                eps=1e-5):
    """Deterministic synthetic parameters. BatchNorm is folded:
       bn(z) = gamma*(z-mean)/sqrt(var+eps) + beta = scale*z + shift
       and the preceding Linear bias is folded into the shift."""
    ks = jax.random.split(key, 16)

    def lin(kw, kb, fan_in, fan_out):
        bound = 1.0 / jnp.sqrt(fan_in)
        w = jax.random.uniform(kw, (fan_in, fan_out), jnp.float32, -bound, bound)
        b = jax.random.uniform(kb, (fan_out,), jnp.float32, -bound, bound)
        return w, b

    def bn(kg, kb, km, kv, n):
        gamma = 1.0 + 0.1 * jax.random.normal(kg, (n,), jnp.float32)
        beta = 0.1 * jax.random.normal(kb, (n,), jnp.float32)
        mean = 0.1 * jax.random.normal(km, (n,), jnp.float32)
        var = jax.random.uniform(kv, (n,), jnp.float32, 0.5, 1.5)
        scale = gamma / jnp.sqrt(var + eps)
        shift = beta - mean * scale
        return scale, shift

    w1, b1 = lin(ks[0], ks[1], in_features, hidden1)
    bn1_scale, bn1_shift = bn(ks[2], ks[3], ks[4], ks[5], hidden1)
    w2, b2 = lin(ks[6], ks[7], hidden1, hidden2)
    bn2_scale, bn2_shift = bn(ks[8], ks[9], ks[10], ks[11], hidden2)
    w3, b3 = lin(ks[12], ks[13], hidden2, num_classes)

    # Fold linear bias into the batchnorm shift: bn(xW + b) = s*(xW) + (s*b + t)
    return {
        "w1": w1,
        "s1": bn1_scale.reshape(1, hidden1),
        "t1": (bn1_scale * b1 + bn1_shift).reshape(1, hidden1),
        "w2": w2,
        "s2": bn2_scale.reshape(1, hidden2),
        "t2": (bn2_scale * b2 + bn2_shift).reshape(1, hidden2),
        "w3": w3,
        "b3": b3.reshape(1, num_classes),
    }


def reference_forward(x, params):
    h1 = jnp.maximum(x @ params["w1"] * params["s1"] + params["t1"], 0.0)
    h2 = jnp.maximum(h1 @ params["w2"] * params["s2"] + params["t2"], 0.0)
    return h2 @ params["w3"] + params["b3"]


if __name__ == "__main__":
    # prdFC_inputSize = (64*2)*3 = 384 regardless of constructor args.
    batch = 24
    in_features = 384
    num_classes = 4

    key = jax.random.PRNGKey(0)
    k_x, k_p = jax.random.split(key)
    x = jax.random.normal(k_x, (batch, in_features), jnp.float32)
    params = init_params(k_p, in_features=in_features, num_classes=num_classes)
    kparams = prepare_kernel_params(params)

    # At batch=24 the tb cap (ceil(B/2) rounded to 16) gives tb=16 and a
    # 2-step grid with a ragged last block — exercises the masked-writeback
    # path and (on v7x) both TensorCores; production batches use tb up to 2048.
    out = comb_fc_forward(x, kparams)
    out = jax.block_until_ready(out)

    ref = reference_forward(x, params)
    assert out.shape == (batch, num_classes)
    # bf16 layer-1 dot inputs -> looser tolerance vs the f32 reference.
    assert jnp.allclose(out, ref, atol=2e-2, rtol=2e-2), "mismatch vs JAX reference"

    print("KERNEL_OK")
</pallas_src>

<mosaic_0001>
module attributes {stable_mosaic.version = 11 : i64} {
  func.func @_mlp_kernel(%arg0: i32, %arg1: memref<16x384xf32, #tpu.memory_space<vmem>>, %arg2: memref<384x64xbf16, #tpu.memory_space<vmem>>, %arg3: memref<1x64xf32, #tpu.memory_space<vmem>>, %arg4: memref<64x64xf32, #tpu.memory_space<vmem>>, %arg5: memref<1x64xf32, #tpu.memory_space<vmem>>, %arg6: memref<64x4xf32, #tpu.memory_space<vmem>>, %arg7: memref<1x4xf32, #tpu.memory_space<vmem>>, %arg8: memref<16x4xf32, #tpu.memory_space<vmem>>) attributes {dimension_semantics = [#tpu.dimension_semantics<parallel>], iteration_bounds = array<i64: 2>, scalar_prefetch = 0 : i64, scratch_operands = 0 : i64, tpu.core_type = #tpu.core_type<tc>, window_params = [{transform_indices = @transform_0, window_bounds = array<i64: 16, 384>}, {pipeline_mode = #tpu.pipeline_mode<synchronous>, transform_indices = @transform_1, window_bounds = array<i64: 384, 64>}, {pipeline_mode = #tpu.pipeline_mode<synchronous>, transform_indices = @transform_2, window_bounds = array<i64: 1, 64>}, {pipeline_mode = #tpu.pipeline_mode<synchronous>, transform_indices = @transform_3, window_bounds = array<i64: 64, 64>}, {pipeline_mode = #tpu.pipeline_mode<synchronous>, transform_indices = @transform_4, window_bounds = array<i64: 1, 64>}, {pipeline_mode = #tpu.pipeline_mode<synchronous>, transform_indices = @transform_5, window_bounds = array<i64: 64, 4>}, {pipeline_mode = #tpu.pipeline_mode<synchronous>, transform_indices = @transform_6, window_bounds = array<i64: 1, 4>}, {transform_indices = @transform_7, window_bounds = array<i64: 16, 4>}]} {
    %c0 = arith.constant 0 : index
    %c0_0 = arith.constant 0 : index
    %0 = vector.load %arg1[%c0, %c0_0] : memref<16x384xf32, #tpu.memory_space<vmem>>, vector<16x384xf32>
    %1 = arith.truncf %0 : vector<16x384xf32> to vector<16x384xbf16>
    %c0_1 = arith.constant 0 : index
    %c0_2 = arith.constant 0 : index
    %2 = vector.load %arg2[%c0_1, %c0_2] : memref<384x64xbf16, #tpu.memory_space<vmem>>, vector<384x64xbf16>
    %cst = arith.constant dense<0.000000e+00> : vector<16x64xf32>
    %3 = tpu.matmul %1, %2, %cst {dimension_numbers = #tpu.dot_dimension_numbers<[1], [0], [0], [1], [0, 0, 1, 1], [], []>} : vector<16x384xbf16>, vector<384x64xbf16>, vector<16x64xf32> -> vector<16x64xf32>
    %c0_3 = arith.constant 0 : index
    %c0_4 = arith.constant 0 : index
    %4 = vector.load %arg3[%c0_3, %c0_4] : memref<1x64xf32, #tpu.memory_space<vmem>>, vector<1x64xf32>
    %5 = vector.broadcast %4 : vector<1x64xf32> to vector<16x64xf32>
    %6 = arith.addf %3, %5 : vector<16x64xf32>
    %cst_5 = arith.constant 0.000000e+00 : f32
    %7 = vector.broadcast %cst_5 : f32 to vector<16x64xf32>
    %8 = arith.maximumf %6, %7 : vector<16x64xf32>
    %c0_6 = arith.constant 0 : index
    %c0_7 = arith.constant 0 : index
    %9 = vector.load %arg4[%c0_6, %c0_7] : memref<64x64xf32, #tpu.memory_space<vmem>>, vector<64x64xf32>
    %cst_8 = arith.constant dense<0.000000e+00> : vector<16x64xf32>
    %10 = tpu.matmul %8, %9, %cst_8 {dimension_numbers = #tpu.dot_dimension_numbers<[1], [0], [0], [1], [0, 0, 1, 1], [], []>} : vector<16x64xf32>, vector<64x64xf32>, vector<16x64xf32> -> vector<16x64xf32>
    %c0_9 = arith.constant 0 : index
    %c0_10 = arith.constant 0 : index
    %11 = vector.load %arg5[%c0_9, %c0_10] : memref<1x64xf32, #tpu.memory_space<vmem>>, vector<1x64xf32>
    %12 = vector.broadcast %11 : vector<1x64xf32> to vector<16x64xf32>
    %13 = arith.addf %10, %12 : vector<16x64xf32>
    %cst_11 = arith.constant 0.000000e+00 : f32
    %14 = vector.broadcast %cst_11 : f32 to vector<16x64xf32>
    %15 = arith.maximumf %13, %14 : vector<16x64xf32>
    %c0_12 = arith.constant 0 : index
    %c0_13 = arith.constant 0 : index
    %16 = vector.load %arg6[%c0_12, %c0_13] : memref<64x4xf32, #tpu.memory_space<vmem>>, vector<64x4xf32>
    %cst_14 = arith.constant dense<0.000000e+00> : vector<16x4xf32>
    %17 = tpu.matmul %15, %16, %cst_14 {dimension_numbers = #tpu.dot_dimension_numbers<[1], [0], [0], [1], [0, 0, 1, 1], [], []>} : vector<16x64xf32>, vector<64x4xf32>, vector<16x4xf32> -> vector<16x4xf32>
    %c0_15 = arith.constant 0 : index
    %c0_16 = arith.constant 0 : index
    %18 = vector.load %arg7[%c0_15, %c0_16] : memref<1x4xf32, #tpu.memory_space<vmem>>, vector<1x4xf32>
    %19 = vector.broadcast %18 : vector<1x4xf32> to vector<16x4xf32>
    %20 = arith.addf %17, %19 : vector<16x4xf32>
    %c0_17 = arith.constant 0 : index
    %c0_18 = arith.constant 0 : index
    %21 = vector.load %arg8[%c0_17, %c0_18] : memref<16x4xf32, #tpu.memory_space<vmem>>, vector<16x4xf32>
    tpu.vector_store %arg8[%c0_17, %c0_18], %20 {strides = array<i32>} : memref<16x4xf32, #tpu.memory_space<vmem>>, vector<16x4xf32>,
    return
  }
  func.func @transform_0(%arg0: i32) -> (i32, i32) {
    %c0_i32 = arith.constant 0 : i32
    %c0_i32_0 = arith.constant 0 : i32
    return %arg0, %c0_i32 : i32, i32
  }
  func.func @transform_1(%arg0: i32) -> (i32, i32) {
    %c0_i32 = arith.constant 0 : i32
    %c0_i32_0 = arith.constant 0 : i32
    %c0_i32_1 = arith.constant 0 : i32
    return %c0_i32, %c0_i32_0 : i32, i32
  }
  func.func @transform_2(%arg0: i32) -> (i32, i32) {
    %c0_i32 = arith.constant 0 : i32
    %c0_i32_0 = arith.constant 0 : i32
    %c0_i32_1 = arith.constant 0 : i32
    return %c0_i32, %c0_i32_0 : i32, i32
  }
  func.func @transform_3(%arg0: i32) -> (i32, i32) {
    %c0_i32 = arith.constant 0 : i32
    %c0_i32_0 = arith.constant 0 : i32
    %c0_i32_1 = arith.constant 0 : i32
    return %c0_i32, %c0_i32_0 : i32, i32
  }
  func.func @transform_4(%arg0: i32) -> (i32, i32) {
    %c0_i32 = arith.constant 0 : i32
    %c0_i32_0 = arith.constant 0 : i32
    %c0_i32_1 = arith.constant 0 : i32
    return %c0_i32, %c0_i32_0 : i32, i32
  }
  func.func @transform_5(%arg0: i32) -> (i32, i32) {
    %c0_i32 = arith.constant 0 : i32
    %c0_i32_0 = arith.constant 0 : i32
    %c0_i32_1 = arith.constant 0 : i32
    return %c0_i32, %c0_i32_0 : i32, i32
  }
  func.func @transform_6(%arg0: i32) -> (i32, i32) {
    %c0_i32 = arith.constant 0 : i32
    %c0_i32_0 = arith.constant 0 : i32
    %c0_i32_1 = arith.constant 0 : i32
    return %c0_i32, %c0_i32_0 : i32, i32
  }
  func.func @transform_7(%arg0: i32) -> (i32, i32) {
    %c0_i32 = arith.constant 0 : i32
    %c0_i32_0 = arith.constant 0 : i32
    return %arg0, %c0_i32 : i32, i32
  }
}

</mosaic_0001>

<bundles_post_ra>
// kernel: tpu_custom_call.1
= control target key start
LH: loop header
LB: loop body
LE: loop exit
PB: predicated region body
PF: predicated region fallthrough
CT: control target
= control target key end

     0   :  { %s1431_s24 = smov 0   ;;  %s1433_s25 = smov 0   ;;  %s1656_s0 = inlined_call_operand.vmem [shape: f32[24,384], index: 0, kind: input, shape index: {}]   ;;  %s1657_s1 = inlined_call_operand.vmem [shape: bf16[384,64], index: 1, kind: input, shape index: {}]   ;;  %s1658_s2 = inlined_call_operand.vmem [shape: f32[1,64], index: 2, kind: input, shape index: {}]   ;;  %s1659_s3 = inlined_call_operand.vmem [shape: f32[64,64], index: 3, kind: input, shape index: {}]   ;;  %s1660_s4 = inlined_call_operand.vmem [shape: f32[1,64], index: 4, kind: input, shape index: {}]   ;;  %s1661_s5 = inlined_call_operand.vmem [shape: f32[64,4], index: 5, kind: input, shape index: {}]   ;;  %s1662_s6 = inlined_call_operand.vmem [shape: f32[1,4], index: 6, kind: input, shape index: {}]   ;;  %s1663_s7 = inlined_call_operand.vmem [shape: f32[24,4], index: 7, kind: output, shape index: {}]  }
   0x1   :  { %s1435_s26 = smov 0  }
   0x2 LB: > { %s1444_s27 = sadd.s32 4294967295, %s1355_s26   ;;  %s1446_s28 = sadd.s32 1, %s1355_s26   ;;  %s1355_s26 = sphi %s1435_s26, %s1667_s26   ;;  %s1351_s25 = sphi %s1433_s25, %s1666_s25   ;;  %s1347_s24 = sphi %s1431_s24, %s1665_s24  }
   0x3   : > { %s173_s29 = ssub.s32 %s1355_s26, %s1446_s28  ;;  %s176_s30 = sadd.s32 1, %s1351_s25 }
   0x4   : > { %p174_p0 = scmp.eq.s32.totalorder %s173_s29, 0  ;;  %p186_p1 = scmp.ne.s32.totalorder %s1351_s25, %s1347_s24 }
   0x5   : > { %p187_p2 = scmp.eq.s32.totalorder %s1444_s27, 1  ;;  %p1022_p3 = scmp.ge.s32.totalorder %s1355_s26, 1 }
   0x6   : > { %s1454_s8 = scalar_select %p174_p0, %s1351_s25, %s176_s30  }
   0x7   : > { %p1456_p4 = por %p187_p2, %p186_p1  ;;  %p249_p5 = scmp.lt.s32.totalorder %s1355_s26, 3 }
   0x9   : > { %p250_p6 = pnand %p1022_p3, %p249_p5 }
   0xa   : > { %s1485_s26 = sshll.u32 (!%p250_p6), %s1444_s27, 1  ;;  %s283_s19 = sand.u32 (!%p250_p6), 1, %s1347_s24  }
   0xb   : > { %253 = sbr.rel (%p250_p6) target bundleno = 693 (0x2b5), region = 48  ;;  %p292_p7 = scmp.lt.s32.totalorder (!%p250_p6), %s1485_s26, 2 }
  0x10   : > { %v1277_v0 = vld [vmem:[%s1657_s1 + $0x78] sm:$0xff]   ;;  %v1389_v1 = vmov 0.0   ;;  %v1280_v4 = vld [vmem:[%s1657_s1 + $0x70] sm:$0xff]   ;;  %vm1390_vm0 = vmmov 0   ;;  %v1283_v7 = vld [vmem:[%s1657_s1 + $0x68] sm:$0xff]   ;;  %s293_s20 = scalar_select %p292_p7, %s1485_s26, 2 }
  0x11   : > { %1128 = vmatprep.subr.bf16.mxu1 %v1389_v1  ;;  %v1278_v2 = vld [vmem:[%s1657_s1 + $0x38] sm:$0xff]   ;;  %1077 = vmatprep.subr.bf16.mxu0 %v1277_v0  ;;  %v1281_v5 = vld [vmem:[%s1657_s1 + $0x30] sm:$0xff]   ;;  %v1284_v8 = vld [vmem:[%s1657_s1 + $0x28] sm:$0xff]   ;;  %vm616_vm1 = vcmask 523264   ;;  %vm796_vm2 = vcmask 31744   ;;  %s807_s24 = ssub.s32 (%p1456_p4), 3, %s1485_s26 }
  0x12   : > { %v1279_v3 = vld [vmem:[%s1657_s1 + $0xb8] sm:$0xff]   ;;  %1078 = vmatpush3.bf16.msra.mxu0 %v1278_v2  ;;  %1144 = vmatprep.mubr.msk.bf16.mxu1 %vm1390_vm0, %v1389_v1  ;;  %v1282_v6 = vld [vmem:[%s1657_s1 + $0xb0] sm:$0xff]   ;;  %v1285_v9 = vld [vmem:[%s1657_s1 + $0xa8] sm:$0xff]   ;;  %s1186_s11 = smul.u32 24, %s293_s20  ;;  %s1074_s29 = sshll.u32 (%p1456_p4), %s1444_s27, 4 }
  0x13   : > { %1129 = vmatpush3.bf16.msra.mxu1 %v1279_v3  ;;  %1079 = vmatprep.subr.bf16.mxu0 %v1280_v4  ;;  %v1286_v10 = vld [vmem:[%s1657_s1 + $0x60] sm:$0xff]   ;;  %v1289_v13 = vld [vmem:[%s1657_s1 + $0x58] sm:$0xff]   ;;  %v1292_v16 = vld [vmem:[%s1657_s1 + $0x50] sm:$0xff]   ;;  %p808_p8 = scmp.lt.s32.totalorder (%p1456_p4), %s807_s24, 2 }
  0x14   : > { %1130 = vmatprep.subr.bf16.mxu1 %v1389_v1  ;;  %v1287_v11 = vld [vmem:[%s1657_s1 + $0x20] sm:$0xff]   ;;  %v1290_v14 = vld [vmem:[%s1657_s1 + $0x18] sm:$0xff]   ;;  %v1293_v17 = vld [vmem:[%s1657_s1 + $0x10] sm:$0xff]   ;;  %s296_s20 = scalar_lea.vmem %s1656_s0, %s1186_s11  ;;  %s1622_s11 = scalar_lea.vmem (%p1456_p4), %s1663_s7, %s1074_s29  }
  0x15   : > { %v1288_v12 = vld [vmem:[%s1657_s1 + $0xa0] sm:$0xff]   ;;  %v1291_v15 = vld [vmem:[%s1657_s1 + $0x98] sm:$0xff]   ;;  %v1294_v18 = vld [vmem:[%s1657_s1 + $0x90] sm:$0xff]  }
  0x16   : > { %1080 = vmatpush3.bf16.msra.mxu0 %v1281_v5  ;;  %v1295_v19 = vld [vmem:[%s1657_s1 + $0x48] sm:$0xff]   ;;  %v1298_v22 = vld [vmem:[%s1657_s1 + $0x40] sm:$0xff]   ;;  %v312_v28 = vld [vmem:[%s296_s20 + $0x18] sm:$0xff] }
  0x17   : > { %1131 = vmatpush3.bf16.msra.mxu1 %v1282_v6  ;;  %1081 = vmatprep.subr.bf16.mxu0 %v1283_v7  ;;  %v1296_v20 = vld [vmem:[%s1657_s1 + $0x8] sm:$0xff]   ;;  %v313_v24 = vld [vmem:[%s296_s20 + $0x20] sm:$0xff]  ;;  %v311_v30 = vld [vmem:[%s296_s20 + $0x10] sm:$0xff] }
  0x18   : > { %1132 = vmatprep.subr.bf16.mxu1 %v1389_v1  ;;  %v1297_v21 = vld [vmem:[%s1657_s1 + $0x88] sm:$0xff]   ;;  %v1299_v26 = vld [vmem:[%s1657_s1] sm:$0xff]   ;;  %v608_v32 = vld [vmem:[%s1659_s3 + $0x38] sm:$0xff] }
  0x19   : > { %v310_v23 = vld [vmem:[%s296_s20 + $0x8] sm:$0xff]  ;;  %v309_v27 = vld [vmem:[%s296_s20] sm:$0xff]  ;;  %v607_v35 = vld [vmem:[%s1659_s3 + $0x30] sm:$0xff] }
  0x1a   : > { %1082 = vmatpush3.bf16.msra.mxu0 %v1284_v8  ;;  %v316_v25 = vpack.c.bf16 %v313_v24, %v310_v23  ;;  %v1300_v29 = vld [vmem:[%s1657_s1 + $0x80] sm:$0xff]   ;;  %v314_v31 = vld [vmem:[%s296_s20 + $0x28] sm:$0xff]  ;;  %v315_v33 = vpack.c.bf16 %v312_v28, %v309_v27  ;;  %v604_v38 = vld [vmem:[%s1659_s3 + $0x18] sm:$0xff]  ;;  %s1023_s20 = sshll.u32 %s283_s19, 4 }
  0x1b   : > { %1133 = vmatpush3.bf16.msra.mxu1 %v1285_v9  ;;  %1083 = vmatprep.subr.bf16.mxu0 %v1286_v10  ;;  %v317_v34 = vpack.c.bf16 %v314_v31, %v311_v30  ;;  %v606_v36 = vld [vmem:[%s1659_s3 + $0x28] sm:$0xff]  ;;  %v605_v37 = vld [vmem:[%s1659_s3 + $0x20] sm:$0xff]  ;;  %v603_v39 = vld [vmem:[%s1659_s3 + $0x10] sm:$0xff]  ;;  %s1611_s23 = scalar_lea.vmem [#allocation2], %s1023_s20  }
  0x1c   : > { %1134 = vmatprep.subr.bf16.mxu1 %v1389_v1  ;;  %549 = vmatprep.mubr.bf16.mxu0 %v316_v25  ;;  %v602_v40 = vld [vmem:[%s1659_s3 + $0x8] sm:$0xff]  ;;  %v601_v41 = vld [vmem:[%s1659_s3] sm:$0xff]  ;;  %v707_v42 = vld [vmem:[%s1661_s5 + $0x38] sm:$0xff] }
  0x1d   : > { %v706_v43 = vld [vmem:[%s1661_s5 + $0x30] sm:$0xff]  ;;  %v705_v44 = vld [vmem:[%s1661_s5 + $0x28] sm:$0xff]  ;;  %v704_v45 = vld [vmem:[%s1661_s5 + $0x20] sm:$0xff] }
  0x1e   : > { %1084 = vmatpush3.bf16.msra.mxu0 %v1287_v11  ;;  %v1026_v48 = vld [vmem:[%s1658_s2] ss:$0 sm:$0xff]  ;;  %v703_v63 = vld [vmem:[%s1661_s5 + $0x18] sm:$0xff]  ;;  %v702_v0 = vld [vmem:[%s1661_s5 + $0x10] sm:$0xff] }
  0x1f   : > { %1135 = vmatpush3.bf16.msra.mxu1 %v1288_v12  ;;  %1085 = vmatprep.subr.bf16.mxu0 %v1289_v13  ;;  %v700_v2 = vld [vmem:[%s1661_s5] sm:$0xff] }
  0x20   : > { %1136 = vmatprep.subr.bf16.mxu1 %v1389_v1  ;;  %v1051_v3 = vld [vmem:[%s1660_s4] ss:$0 sm:$0xff] }
  0x21   : > { %v1054_v10 = vld [vmem:[%s1662_s6] ss:$0 sm:$0xff] }
  0x22   : > { %1086 = vmatpush3.bf16.msra.mxu0 %v1290_v14 }
  0x23   : > { %1137 = vmatpush3.bf16.msra.mxu1 %v1291_v15  ;;  %1087 = vmatprep.subr.bf16.mxu0 %v1292_v16 }
  0x24   : > { %1138 = vmatprep.subr.bf16.mxu1 %v1389_v1 }
  0x26   : > { %1088 = vmatpush3.bf16.msra.mxu0 %v1293_v17 }
  0x27   : > { %1139 = vmatpush3.bf16.msra.mxu1 %v1294_v18  ;;  %1089 = vmatprep.subr.bf16.mxu0 %v1295_v19 }
  0x28   : > { %1140 = vmatprep.subr.bf16.mxu1 %v1389_v1 }
  0x2a   : > { %1090 = vmatpush3.bf16.msra.mxu0 %v1296_v20 }
  0x2b   : > { %1141 = vmatpush3.bf16.msra.mxu1 %v1297_v21  ;;  %1091 = vmatprep.subr.bf16.mxu0 %v1298_v22 }
  0x2c   : > { %1142 = vmatprep.subr.bf16.mxu1 %v1389_v1  ;;  %v701_v1 = vld [vmem:[%s1661_s5 + $0x8] sm:$0xff] }
  0x2e   : > { %1092 = vmatpush3.bf16.msra.mxu0 %v1299_v26 }
  0x2f   : > { %1143 = vmatpush3.bf16.msra.mxu1 %v1300_v29  ;;  %1148 = vmatprep.subr.mxu0 %v608_v32 }
  0x30   : > { %1167 = vmatprep.subr.mxu1 %v707_v42 }
  0x31   : > { %550 = vmatmul.mubr.bf16.vlgmr.msra.gmra.mxu0 %v315_v33 }
  0x32   : > { %1145 = vmatmul.mubr.bf16.vlgmr.msra.gmra.mxu1 %v317_v34  ;;  %1149 = vmatpush3.msra.mxu0 %v608_v32 }
  0x33   : > { %1150 = vmatprep.subr.mxu0 %v607_v35  ;;  %1168 = vmatpush3.msra.mxu1 %v707_v42 }
  0x34   : > { %1151 = vmatpush3.msra.mxu0 %v607_v35  ;;  %1169 = vmatprep.subr.mxu1 %v706_v43 }
  0x35   : > { %1152 = vmatprep.subr.mxu0 %v606_v36  ;;  %1170 = vmatpush3.msra.mxu1 %v706_v43 }
  0x36   : > { %1153 = vmatpush3.msra.mxu0 %v606_v36  ;;  %1171 = vmatprep.subr.mxu1 %v705_v44 }
  0x37   : > { %1154 = vmatprep.subr.mxu0 %v605_v37  ;;  %1172 = vmatpush3.msra.mxu1 %v705_v44 }
  0x38   : > { %1155 = vmatpush3.msra.mxu0 %v605_v37  ;;  %1173 = vmatprep.subr.mxu1 %v704_v45 }
  0x39   : > { %1156 = vmatprep.subr.mxu0 %v604_v38  ;;  %1174 = vmatpush3.msra.mxu1 %v704_v45 }
  0x3a   : > { %1157 = vmatpush3.msra.mxu0 %v604_v38  ;;  %1175 = vmatprep.subr.mxu1 %v703_v63 }
  0x3b   : > { %1158 = vmatprep.subr.mxu0 %v603_v39  ;;  %1176 = vmatpush3.msra.mxu1 %v703_v63 }
  0x3c   : > { %1159 = vmatpush3.msra.mxu0 %v603_v39  ;;  %1177 = vmatprep.subr.mxu1 %v702_v0 }
  0x3d   : > { %1160 = vmatprep.subr.mxu0 %v602_v40  ;;  %1178 = vmatpush3.msra.mxu1 %v702_v0 }
  0x3e   : > { %1161 = vmatpush3.msra.mxu0 %v602_v40  ;;  %1179 = vmatprep.subr.mxu1 %v701_v1 }
  0x3f   : > { %1162 = vmatprep.subr.mxu0 %v601_v41  ;;  %1180 = vmatpush3.msra.mxu1 %v701_v1 }
  0x40   : > { %1163 = vmatpush3.msra.mxu0 %v601_v41  ;;  %1181 = vmatprep.subr.mxu1 %v700_v2 }
  0x41   : > { %1182 = vmatpush3.msra.mxu1 %v700_v2 }
  0xf1   : > { %v1093_v46 = vpop.f32.mrf.mxu0 }
  0xf2   : > { %v592_v47 = vpop.f32.mrf.mxu1 }
  0xf3   : > { %v1094_v49 = vpop.f32.mrf.mxu0 }
  0xf4   : > { %v1095_v50 = vadd.f32 %v1094_v49, %v1093_v46  ;;  %v1146_v51 = vpop.f32.mrf.mxu1 }
  0xf5   : > { %v1096_v52 = vpop.f32.mrf.mxu0 }
  0xf6   : > { %v552_v53 = vadd.f32 %v1095_v50, %v1026_v48  ;;  %v595_v54 = vpop.f32.mrf.mxu1 }
  0xf7   : > { %v1097_v55 = vpop.f32.mrf.mxu0 }
  0xf8   : > { %v593_v56 = vadd.f32 %v592_v47, %v552_v53  ;;  %v1098_v57 = vadd.f32 %v1097_v55, %v1096_v52  ;;  %v1147_v58 = vpop.f32.mrf.mxu1 }
  0xfa   : > { %v599_v59 = vmax.f32 %v593_v56, 0.0  ;;  %v555_v60 = vadd.f32 %v1098_v57, %v1026_v48 }
  0xfc   : > { %v596_v61 = vadd.f32 %v595_v54, %v555_v60  ;;  %1164 = vmatprep.mubr.msk.f32.mxu0 %vm616_vm1, %v599_v59 }
  0xfe   : > { %v600_v62 = vmax.f32 %v596_v61, 0.0 }
 0x100   : > { %1165 = vmatmul.mubr.msk.f32.vlgmr.msra.gmra.mxu0 %vm616_vm1, %v600_v62 }
 0x1c0   : > { %v1166_v4 = vpop.f32.mrf.mxu0 }
 0x1c1   : > { %v695_v5 = vadd.f32 %v1166_v4, %v1051_v3 }
 0x1c2   : > { %v689_v6 = vpop.f32.mrf.mxu0 }
 0x1c3   : > { %v690_v7 = vadd.f32 %v1051_v3, %v689_v6  ;;  %v699_v9 = vmax.f32 %v695_v5, 0.0 }
 0x1c5   : > { %v698_v8 = vmax.f32 %v690_v7, 0.0 }
 0x1c7   : > { %1183 = vmatprep.mubr.msk.f32.mxu1 %vm616_vm1, %v698_v8 }
 0x1c8   : > { %1184 = vmatmul.mubr.msk.f32.vlgmr.msra.gmra.mxu1 %vm616_vm1, %v699_v9 }
 0x288   : > { %v1185_v11 = vpop.f32.mrf.mxu1 }
 0x289   : > { %v793_v12 = vadd.f32 %v1185_v11, %v1054_v10  ;;  %805 = sbr.rel (!%p1456_p4) target bundleno = 693 (0x2b5), region = 52 }
 0x28a   : > { %v787_v13 = vpop.f32.mrf.mxu1 }
 0x28b   : > { %798 = vst.msk [vmem:[%s1611_s23 + $0x8] sm:$0xff] %vm796_vm2, %v793_v12  ;;  %v788_v14 = vadd.f32 %v1054_v10, %v787_v13 }
 0x28d   : > { %797 = vst.msk [vmem:[%s1611_s23] sm:$0xff] %vm796_vm2, %v788_v14 }
 0x28e   : > { %s1669_s24 = smov (!%p808_p8, %s807_s24), 2 }
 0x28f   : > { %s1059_s12 = sshll.u32 %s1669_s24, 7 }
 0x290   : > { %p1062_p9 = scmp.eq.s32.totalorder %s1059_s12, 0 }
 0x291   : > { %s1628_s13 = sshrl.u32 (!%p1062_p9), %s1669_s24, 1 }
 0x292   : > { %816 = sbr.rel (%p1062_p9) target bundleno = 693 (0x2b5), region = 56  ;;  %p1063_p10 = scmp.le.s32.totalorder (!%p1062_p9), %s1628_s13, 0 }
 0x297   : > { %975 = sbr.rel (%p1063_p10) target bundleno = 676 (0x2a4), region = 132  ;;  %s1357_s27 = smov (!%p1063_p10), %s1622_s11  }
 0x298   : > { %s1361_s9 = smov (!%p1063_p10), %s1611_s23   ;;  %s1365_s26 = smov (!%p1063_p10), 0  }
 0x299   : > { %s1369_s14 = smov (!%p1063_p10), 0  }
 0x29c LB: >> { %v881_v15 = vld [vmem:[%s1363_s9] sm:$0xff]  ;;  %v883_v16 = vld [vmem:[%s1363_s9 + $0x8] sm:$0xff]  ;;  %s885_s15 = sadd.s32 1, %s1367_s26  ;;  %s875_s14 = sadd.s32 1, %s1371_s14   ;;  %s1371_s14 = sphi %s1369_s14, %s875_s14   ;;  %s1367_s26 = sphi %s1365_s26, %s1366_s26   ;;  %s1363_s9 = sphi %s1361_s9, %s890_s9   ;;  %s1359_s27 = sphi %s1357_s27, %s891_s27  }
 0x29d   : >> { %882 = vst [vmem:[%s1359_s27] sm:$0xff] %v881_v15  ;;  %884 = vst [vmem:[%s1359_s27 + $0x8] sm:$0xff] %v883_v16  ;;  %p886_p11 = scmp.ge.s32.totalorder %s885_s15, %s1628_s13  ;;  %p874_p12 = scmp.ge.s32.totalorder %s875_s14, %s1628_s13 }
 0x29f   : >> { %s1671_s15 = smov (%p886_p11, %s885_s15), 0  ;;  %877 = sbr.rel (!%p874_p12) target bundleno = 668 (0x29c), region = 138 }
 0x2a0   : >> { %s1064_s16 = sshll.u32 %s1671_s15, 4  ;;  %s1366_s26 = smov %s1671_s15  }
 0x2a1   : >> { %s890_s9 = scalar_lea.vmem %s1611_s23, %s1064_s16 [#allocation2]   ;;  %s891_s27 = scalar_lea.vmem %s1622_s11, %s1064_s16  }
 0x2a4 PF: > { %s1638_s17 = sand.u32 1, %s1669_s24   ;;  %s1075_s18 = sshll.u32 %s1628_s13, 4 }
 0x2a5   : > { %s896_s19 = scalar_lea.vmem %s1611_s23, %s1075_s18 [#allocation2]   ;;  %s898_s20 = scalar_lea.vmem %s1622_s11, %s1075_s18  }
 0x2a6   : > { %p1069_p13 = scmp.le.s32.totalorder %s1638_s17, 0 }
 0x2a7   : > { %s1373_s21 = smov (!%p1069_p13), %s898_s20   ;;  %s1377_s22 = smov (!%p1069_p13), %s896_s19  }
 0x2a8   : > { %989 = sbr.rel (%p1069_p13) target bundleno = 693 (0x2b5), region = 143  ;;  %s1381_s29 = smov (!%p1069_p13), 0  }
 0x2a9   : > { %s1385_s30 = smov (!%p1069_p13), 0  }
 0x2ad LB: >> { %v908_v17 = vld [vmem:[%s1379_s22] sm:$0xff]  ;;  %s910_s24 = sadd.s32 1, %s1383_s29  ;;  %s902_s30 = sadd.s32 1, %s1387_s30   ;;  %s1387_s30 = sphi %s1385_s30, %s902_s30   ;;  %s1383_s29 = sphi %s1381_s29, %s1382_s29   ;;  %s1379_s22 = sphi %s1377_s22, %s915_s22   ;;  %s1375_s21 = sphi %s1373_s21, %s916_s21  }
 0x2ae   : >> { %909 = vst [vmem:[%s1375_s21] sm:$0xff] %v908_v17  ;;  %p911_p0 = scmp.ge.s32.totalorder %s910_s24, %s1638_s17  ;;  %p901_p1 = scmp.ge.s32.totalorder %s902_s30, %s1638_s17 }
 0x2b0   : >> { %s1673_s24 = smov (%p911_p0, %s910_s24), 0  ;;  %904 = sbr.rel (!%p901_p1) target bundleno = 685 (0x2ad), region = 149 }
 0x2b1   : >> { %s1070_s23 = sshll.u32 %s1673_s24, 3  ;;  %s1382_s29 = smov %s1673_s24  }
 0x2b2   : >> { %s915_s22 = scalar_lea.vmem %s896_s19, %s1070_s23 [#allocation2]   ;;  %s916_s21 = scalar_lea.vmem %s898_s20, %s1070_s23  }
 0x2b5 PF: > { %p14_p2 = scmp.ge.s32.totalorder %s1446_s28, 4   ;;  %s1665_s24 = smov %s1351_s25 }
 0x2b6   : > { %s1666_s25 = smov %s1454_s8  ;;  %s1667_s26 = smov %s1446_s28 }
 0x2b7   :  { %16 = sbr.rel (!%p14_p2) target bundleno = 2 (0x2), region = 160 }

</bundles_post_ra>
